<compile_context>
chip_gen: v6e
topology: v6e:2x2x1
jax: 0.10.0
libtpu: 0.0.40
codegen_flags: <defaults>
</compile_context>

<pallas_src>
import jax
import jax.numpy as jnp
from jax import lax
from jax.experimental import pallas as pl
from jax.experimental.pallas import tpu as pltpu


# ------------------------------- helpers -------------------------------------

def _round_up(x, m):
    return (x + m - 1) // m * m


def _compiler_params(dimension_semantics, working_set_bytes):
    # Derive the VMEM limit from the actual double-buffered working set plus
    # headroom, instead of a blanket number: stays safe on v7x's 64 MiB VMEM
    # and never starves the pipeline on v5e/v6e.
    limit = int(min(max(2 * working_set_bytes + (4 << 20), 16 << 20), 48 << 20))
    return pltpu.CompilerParams(dimension_semantics=dimension_semantics,
                                vmem_limit_bytes=limit)


# ----------------------------- Pallas kernels --------------------------------

def _conv_matmul_kernel(x_ref, w_ref, b_ref, o_ref):
    # Single-K-step path: whole 9*C reduction resident; fused bias + downcast.
    acc = jnp.dot(x_ref[...], w_ref[...], preferred_element_type=jnp.float32)
    o_ref[...] = (acc + b_ref[...]).astype(o_ref.dtype)


def _conv_matmul_acc_kernel(x_ref, w_ref, b_ref, o_ref, acc_ref):
    # K-tiled fallback (very large C): f32 VMEM accumulator, zeroed at k==0,
    # bias add + downcast fused into the last K step.
    k = pl.program_id(2)

    @pl.when(k == 0)
    def _():
        acc_ref[...] = jnp.zeros_like(acc_ref)

    acc_ref[...] += jnp.dot(x_ref[...], w_ref[...],
                            preferred_element_type=jnp.float32)

    @pl.when(k == pl.num_programs(2) - 1)
    def _():
        o_ref[...] = (acc_ref[...] + b_ref[...]).astype(o_ref.dtype)


def _avg_pool_kernel(x_ref, p_ref, o_ref):
    # One matmul against a constant block-diagonal pooling matrix does the 2x2
    # mean + compaction; operands stay in the input dtype (no whole-tile
    # upcast), accumulation is f32, output store is lane-dense.
    o_ref[...] = jnp.dot(x_ref[...], p_ref[...],
                         preferred_element_type=jnp.float32).astype(o_ref.dtype)


# ------------------------------- wrappers -------------------------------------

def downsample_conv(x_nchw, weight, bias, compute_dtype=jnp.bfloat16):
    """with_conv=True path: pad (0,1,0,1) then Conv2d(C, C, k=3, s=2, p=0)."""
    N, C, H, W = x_nchw.shape
    Co = weight.shape[0]
    out_dtype = x_nchw.dtype

    OH = (H + 1 - 3) // 2 + 1
    OW = (W + 1 - 3) // 2 + 1

    # Asymmetric pad (bottom/right by 1), as in F.pad(x, (0, 1, 0, 1)).
    x_pad = jnp.pad(x_nchw, ((0, 0), (0, 0), (0, 1), (0, 1)))

    # im2col: slice the 9 taps straight off padded NCHW, transpose + cast per
    # tap so XLA fuses everything into the single bf16 concat producer.
    # K ordering = (kh, kw, ci).
    # TODO(synk): fuse im2col into the kernel (memory_space=pl.ANY + per-tap
    # strided DMA) to drop the remaining ~2.25x patch-slab HBM traffic.
    taps = []
    for kh in range(3):
        for kw in range(3):
            t = x_pad[:, :, kh:kh + 2 * OH - 1:2, kw:kw + 2 * OW - 1:2]
            taps.append(jnp.transpose(t, (0, 2, 3, 1)).astype(compute_dtype))
    x_col = jnp.concatenate(taps, axis=-1).reshape(N * OH * OW, 9 * C)

    # weight (Co, Ci, 3, 3) -> (kh, kw, ci, co) -> (9*C, Co); bias kept in f32.
    w_mat = jnp.transpose(weight, (2, 3, 1, 0)).reshape(9 * C, Co)
    w_mat = w_mat.astype(compute_dtype)
    b_mat = bias.reshape(1, Co).astype(jnp.float32)

    M, K = x_col.shape
    esz = jnp.dtype(compute_dtype).itemsize
    osz = jnp.dtype(out_dtype).itemsize

    # Co tile: full extent when small / not 128-aligned (no padded MXU work);
    # 128/256-granular otherwise.
    if Co % 128 == 0 and Co > 256:
        tn = 256 if Co % 256 == 0 else 128
    else:
        tn = Co

    # M tile: large enough to amortize per-step overhead; >=2 blocks when M is
    # large so both v7x TensorCores get work.
    if M >= 1024:
        tm = 512
    elif M >= 256:
        tm = 256
    else:
        tm = _round_up(M, 8)

    # K: keep the whole reduction as one full-extent block (weights resident,
    # no accumulator / init / finalize) unless the weight tile would be huge.
    num_k = 1
    if K * tn * esz > 8 * 1024 * 1024:
        for cand in range(2, 9):
            if K % cand == 0 and (K // cand) % 128 == 0:
                num_k = cand
                break

    gm, gn = pl.cdiv(M, tm), pl.cdiv(Co, tn)

    if num_k == 1:
        vmem = tm * K * esz + K * tn * esz + tn * 4 + tm * tn * osz
        out_flat = pl.pallas_call(
            _conv_matmul_kernel,
            out_shape=jax.ShapeDtypeStruct((M, Co), out_dtype),
            grid=(gm, gn),
            in_specs=[
                pl.BlockSpec((tm, K), lambda i, j: (i, 0)),
                pl.BlockSpec((K, tn), lambda i, j: (0, j)),
                pl.BlockSpec((1, tn), lambda i, j: (0, j)),
            ],
            out_specs=pl.BlockSpec((tm, tn), lambda i, j: (i, j)),
            compiler_params=_compiler_params(("parallel", "parallel"), vmem),
        )(x_col, w_mat, b_mat)
    else:
        tk = K // num_k
        vmem = tm * tk * esz + tk * tn * esz + tn * 4 + tm * tn * (osz + 4)
        out_flat = pl.pallas_call(
            _conv_matmul_acc_kernel,
            out_shape=jax.ShapeDtypeStruct((M, Co), out_dtype),
            grid=(gm, gn, num_k),
            in_specs=[
                pl.BlockSpec((tm, tk), lambda i, j, k: (i, k)),
                pl.BlockSpec((tk, tn), lambda i, j, k: (k, j)),
                pl.BlockSpec((1, tn), lambda i, j, k: (0, j)),
            ],
            out_specs=pl.BlockSpec((tm, tn), lambda i, j, k: (i, j)),
            scratch_shapes=[pltpu.VMEM((tm, tn), jnp.float32)],
            compiler_params=_compiler_params(
                ("parallel", "parallel", "arbitrary"), vmem),
        )(x_col, w_mat, b_mat)

    out = out_flat.reshape(N, OH, OW, Co)
    return jnp.transpose(out, (0, 3, 1, 2))           # back to NCHW


def downsample_avgpool(x_nchw):
    """with_conv=False path: avg_pool2d(kernel_size=2, stride=2)."""
    N, C, H, W = x_nchw.shape
    OH, OW = H // 2, W // 2
    dt = x_nchw.dtype
    esz = jnp.dtype(dt).itemsize

    # PyTorch floor behavior: drop an odd trailing H row (odd W is handled for
    # free by zero columns in the pooling matrix, so no crop/copy along W).
    x = x_nchw if H % 2 == 0 else x_nchw[:, :, :2 * OH, :]

    R2 = N * C * OH                                    # total pooled rows

    # Pack `kp` H-row-pairs per flattened row so the pooled output slab is
    # >=128 lanes wide (lane-dense stores, full MXU tiles).  This is a pure
    # reshape of the contiguous NCHW buffer -- no data movement.
    kp = 1
    if OW < 128 and R2 > 1:
        want = -(-128 // OW)                           # ceil(128 / OW)
        up = [c for c in range(want, min(2 * want, R2) + 1)
              if R2 % c == 0 and c * 2 * W <= 4096]
        if up:
            kp = up[0]
        else:
            down = [c for c in range(min(want, R2), 0, -1)
                    if R2 % c == 0 and c * 2 * W <= 4096]
            kp = down[0] if down else 1

    R3 = R2 // kp
    row_w = kp * 2 * W
    x2d = x.reshape(R3, row_w)

    # Constant block-diagonal pooling matrix (carries the 0.25 factor; zero
    # columns drop an odd trailing W column).  Exact in bf16 as well.
    w_idx = jnp.arange(2 * W) % W
    p_pair = (((w_idx[:, None] // 2) == jnp.arange(OW)[None, :]) &
              (w_idx[:, None] < 2 * OW)).astype(jnp.float32) * 0.25
    pool_mat = jnp.kron(jnp.eye(kp, dtype=jnp.float32), p_pair).astype(dt)

    # Row tiles: ~4 MiB input blocks (HBM roofline incl. v7x's 3.2 TB/s HBM);
    # multiple-of-8 sublanes, partial edge block handled by the grid (no pad).
    budget_rows = max(8, (4 * 1024 * 1024) // (row_w * esz))
    trr = R3 if R3 <= budget_rows else max(8, (budget_rows // 8) * 8)
    grid_r = pl.cdiv(R3, trr)

    vmem = trr * row_w * esz + row_w * kp * OW * esz + trr * kp * OW * esz
    out2d = pl.pallas_call(
        _avg_pool_kernel,
        out_shape=jax.ShapeDtypeStruct((R3, kp * OW), dt),
        grid=(grid_r,),
        in_specs=[
            pl.BlockSpec((trr, row_w), lambda i: (i, 0)),
            pl.BlockSpec((row_w, kp * OW), lambda i: (0, 0)),
        ],
        out_specs=pl.BlockSpec((trr, kp * OW), lambda i: (i, 0)),
        compiler_params=_compiler_params(("parallel",), vmem),
    )(x2d, pool_mat)

    return out2d.reshape(N, C, OH, OW)


def downsample(x_nchw, with_conv, weight=None, bias=None):
    if with_conv:
        return downsample_conv(x_nchw, weight, bias)
    return downsample_avgpool(x_nchw)


# ------------------------------ references ------------------------------------

def _conv_ref(x_nchw, weight, bias):
    x_pad = jnp.pad(x_nchw, ((0, 0), (0, 0), (0, 1), (0, 1)))
    out = lax.conv_general_dilated(
        x_pad, weight, window_strides=(2, 2), padding="VALID",
        dimension_numbers=("NCHW", "OIHW", "NCHW"))
    return out + bias.reshape(1, -1, 1, 1)


def _pool_ref(x_nchw):
    N, C, H, W = x_nchw.shape
    return x_nchw.reshape(N, C, H // 2, 2, W // 2, 2).mean(axis=(3, 5))


# --------------------------------- main ---------------------------------------

if __name__ == "__main__":
    key = jax.random.PRNGKey(0)
    k_x, k_w, k_b = jax.random.split(key, 3)

    N, C, H, W = 2, 4, 16, 16
    x = jax.random.normal(k_x, (N, C, H, W), dtype=jnp.float32)

    # Deterministic synthetic conv params (Conv2d(C, C, 3, stride=2, padding=0))
    fan_in = C * 3 * 3
    bound = 1.0 / (fan_in ** 0.5)
    weight = jax.random.uniform(k_w, (C, C, 3, 3), jnp.float32, -bound, bound)
    bias = jax.random.uniform(k_b, (C,), jnp.float32, -bound, bound)

    # with_conv = True path (bf16 MXU operands, f32 accumulation).
    y_conv = downsample(x, True, weight, bias)
    jax.block_until_ready(y_conv)
    y_conv_ref = _conv_ref(x, weight, bias)
    assert y_conv.shape == (N, C, 8, 8)
    assert jnp.allclose(y_conv, y_conv_ref, atol=2e-2, rtol=2e-2), \
        float(jnp.max(jnp.abs(y_conv - y_conv_ref)))

    # with_conv = False path.
    y_pool = downsample(x, False)
    jax.block_until_ready(y_pool)
    y_pool_ref = _pool_ref(x)
    assert y_pool.shape == (N, C, 8, 8)
    assert jnp.allclose(y_pool, y_pool_ref, atol=2e-2, rtol=2e-2), \
        float(jnp.max(jnp.abs(y_pool - y_pool_ref)))

    print("KERNEL_OK")
</pallas_src>

<mosaic_0001>
module attributes {stable_mosaic.version = 11 : i64} {
  func.func @_conv_matmul_kernel(%arg0: i32, %arg1: i32, %arg2: memref<128x36xbf16, #tpu.memory_space<vmem>>, %arg3: memref<36x4xbf16, #tpu.memory_space<vmem>>, %arg4: memref<1x4xf32, #tpu.memory_space<vmem>>, %arg5: memref<128x4xf32, #tpu.memory_space<vmem>>) attributes {dimension_semantics = [#tpu.dimension_semantics<parallel>, #tpu.dimension_semantics<parallel>], iteration_bounds = array<i64: 1, 1>, scalar_prefetch = 0 : i64, scratch_operands = 0 : i64, tpu.core_type = #tpu.core_type<tc>, window_params = [{transform_indices = @transform_0, window_bounds = array<i64: 128, 36>}, {transform_indices = @transform_1, window_bounds = array<i64: 36, 4>}, {transform_indices = @transform_2, window_bounds = array<i64: 1, 4>}, {transform_indices = @transform_3, window_bounds = array<i64: 128, 4>}]} {
    %c0 = arith.constant 0 : index
    %c0_0 = arith.constant 0 : index
    %0 = vector.load %arg2[%c0, %c0_0] : memref<128x36xbf16, #tpu.memory_space<vmem>>, vector<128x36xbf16>
    %c0_1 = arith.constant 0 : index
    %c0_2 = arith.constant 0 : index
    %1 = vector.load %arg3[%c0_1, %c0_2] : memref<36x4xbf16, #tpu.memory_space<vmem>>, vector<36x4xbf16>
    %cst = arith.constant dense<0.000000e+00> : vector<128x4xf32>
    %2 = tpu.matmul %0, %1, %cst {dimension_numbers = #tpu.dot_dimension_numbers<[1], [0], [0], [1], [0, 0, 1, 1], [], []>} : vector<128x36xbf16>, vector<36x4xbf16>, vector<128x4xf32> -> vector<128x4xf32>
    %c0_3 = arith.constant 0 : index
    %c0_4 = arith.constant 0 : index
    %3 = vector.load %arg4[%c0_3, %c0_4] : memref<1x4xf32, #tpu.memory_space<vmem>>, vector<1x4xf32>
    %4 = vector.broadcast %3 : vector<1x4xf32> to vector<128x4xf32>
    %5 = arith.addf %2, %4 : vector<128x4xf32>
    %c0_5 = arith.constant 0 : index
    %c0_6 = arith.constant 0 : index
    %6 = vector.load %arg5[%c0_5, %c0_6] : memref<128x4xf32, #tpu.memory_space<vmem>>, vector<128x4xf32>
    tpu.vector_store %arg5[%c0_5, %c0_6], %5 {strides = array<i32>} : memref<128x4xf32, #tpu.memory_space<vmem>>, vector<128x4xf32>,
    return
  }
  func.func @transform_0(%arg0: i32, %arg1: i32) -> (i32, i32) {
    %c0_i32 = arith.constant 0 : i32
    %c0_i32_0 = arith.constant 0 : i32
    return %arg0, %c0_i32 : i32, i32
  }
  func.func @transform_1(%arg0: i32, %arg1: i32) -> (i32, i32) {
    %c0_i32 = arith.constant 0 : i32
    %c0_i32_0 = arith.constant 0 : i32
    return %c0_i32, %arg1 : i32, i32
  }
  func.func @transform_2(%arg0: i32, %arg1: i32) -> (i32, i32) {
    %c0_i32 = arith.constant 0 : i32
    %c0_i32_0 = arith.constant 0 : i32
    return %c0_i32, %arg1 : i32, i32
  }
  func.func @transform_3(%arg0: i32, %arg1: i32) -> (i32, i32) {
    %c0_i32 = arith.constant 0 : i32
    return %arg0, %arg1 : i32, i32
  }
}

</mosaic_0001>

<bundles_post_ra>
// kernel: tpu_custom_call.1
= control target key start
LH: loop header
LB: loop body
LE: loop exit
PB: predicated region body
PF: predicated region fallthrough
CT: control target
= control target key end

     0   :  { %vm123_vm0 = vcmask 1041408   ;;  %vm98_vm1 = vcmask 293888   ;;  %vm224_vm2 = vcmask 31744   ;;  %s445_s1 = inlined_call_operand.vmem [shape: bf16[36,4], index: 1, kind: input, shape index: {}]   ;;  %s446_s0 = inlined_call_operand.vmem [shape: bf16[128,36], index: 0, kind: input, shape index: {}]   ;;  %s447_s2 = inlined_call_operand.vmem [shape: f32[1,4], index: 2, kind: input, shape index: {}]   ;;  %s448_s3 = inlined_call_operand.vmem [shape: f32[128,4], index: 3, kind: output, shape index: {}]  }
   0x1   :  { %v306_v0 = vld [vmem:[%s445_s1 + $0x10] ss:$0 sps:$4 sm:$0x33]   ;;  %v307_v1 = vld [vmem:[%s445_s1 + $0x8] sm:$0xff]   ;;  %v308_v3 = vld [vmem:[%s445_s1] sm:$0xff]  }
   0x2   :  { %304 = vmatprep.subr.msk.bf16.mxu0 %vm123_vm0, %v306_v0  ;;  %305 = vmatprep.subr.msk.bf16.mxu1 %vm123_vm0, %v306_v0  ;;  %v125_v2 = vsel %vm123_vm0, %v306_v0, 0  ;;  %v309_v4 = vld [vmem:[%s446_s0] sm:$0xff]   ;;  %v311_v6 = vld [vmem:[%s446_s0 + $0x8] sm:$0xff]   ;;  %v313_v8 = vld [vmem:[%s446_s0 + $0x10] sm:$0xff]  }
   0x3   :  { %277 = vmatpush3.bf16.msra.mxu0 %v125_v2  ;;  %301 = vmatpush3.bf16.msra.mxu1 %v125_v2  ;;  %v310_v5 = vld [vmem:[%s446_s0 + $0x20] sm:$0xff]   ;;  %v312_v7 = vld [vmem:[%s446_s0 + $0x28] sm:$0xff]   ;;  %v314_v9 = vld [vmem:[%s446_s0 + $0x30] sm:$0xff]  }
   0x4   :  { %278 = vmatprep.subr.bf16.mxu0 %v307_v1  ;;  %299 = vmatprep.subr.bf16.mxu1 %v307_v1  ;;  %v315_v10 = vld [vmem:[%s446_s0 + $0x18] sm:$0xff]   ;;  %v245_v12 = vld [vmem:[%s447_s2] ss:$0 sm:$0xff] }
   0x5   :  { %282 = vmatprep.mubr.msk.bf16.mxu0 %vm98_vm1, %v309_v4  ;;  %290 = vmatprep.mubr.msk.bf16.mxu1 %vm98_vm1, %v310_v5  ;;  %v316_v11 = vld [vmem:[%s446_s0 + $0x38] sm:$0xff]  }
   0x7   :  { %279 = vmatpush3.bf16.msra.mxu0 %v307_v1  ;;  %302 = vmatpush3.bf16.msra.mxu1 %v307_v1 }
   0x8   :  { %280 = vmatprep.subr.bf16.mxu0 %v308_v3  ;;  %300 = vmatprep.subr.bf16.mxu1 %v308_v3 }
   0xb   :  { %281 = vmatpush3.bf16.msra.mxu0 %v308_v3  ;;  %303 = vmatpush3.bf16.msra.mxu1 %v308_v3 }
   0xe   :  { %283 = vmatmul.mubr.msk.bf16.vlgmr.msra.gmra.mxu0 %vm98_vm1, %v311_v6  ;;  %291 = vmatmul.mubr.msk.bf16.vlgmr.msra.gmra.mxu1 %vm98_vm1, %v312_v7 }
   0xf   :  { %286 = vmatprep.mubr.msk.bf16.mxu0 %vm98_vm1, %v313_v8  ;;  %294 = vmatprep.mubr.msk.bf16.mxu1 %vm98_vm1, %v314_v9 }
  0x16   :  { %287 = vmatmul.mubr.msk.bf16.gmra.mxu0 %vm98_vm1, %v315_v10  ;;  %295 = vmatmul.mubr.msk.bf16.gmra.mxu1 %vm98_vm1, %v316_v11 }
  0xce   :  { %v284_v13 = vpop.f32.mrf.mxu0  ;;  %v292_v14 = vpop.f32.mrf.mxu1 }
  0xcf   :  { %v170_v15 = vadd.f32 %v284_v13, %v245_v12  ;;  %v202_v16 = vadd.f32 %v292_v14, %v245_v12 }
  0xd0   :  { %v161_v17 = vpop.f32.mrf.mxu0  ;;  %v193_v18 = vpop.f32.mrf.mxu1 }
  0xd1   :  { %227 = vst.msk [vmem:[%s448_s3 + $0x10] sm:$0xff] %vm224_vm2, %v170_v15  ;;  %235 = vst.msk [vmem:[%s448_s3 + $0x50] sm:$0xff] %vm224_vm2, %v202_v16  ;;  %v162_v19 = vadd.f32 %v245_v12, %v161_v17  ;;  %v194_v20 = vadd.f32 %v245_v12, %v193_v18 }
  0xd2   :  { %v285_v21 = vpop.f32.mrf.mxu0  ;;  %v293_v22 = vpop.f32.mrf.mxu1 }
  0xd3   :  { %225 = vst.msk [vmem:[%s448_s3] sm:$0xff] %vm224_vm2, %v162_v19  ;;  %233 = vst.msk [vmem:[%s448_s3 + $0x40] sm:$0xff] %vm224_vm2, %v194_v20  ;;  %v173_v23 = vadd.f32 %v285_v21, %v245_v12  ;;  %v205_v24 = vadd.f32 %v293_v22, %v245_v12 }
  0xd4   :  { %v164_v25 = vpop.f32.mrf.mxu0  ;;  %v196_v26 = vpop.f32.mrf.mxu1 }
  0xd5   :  { %228 = vst.msk [vmem:[%s448_s3 + $0x18] sm:$0xff] %vm224_vm2, %v173_v23  ;;  %236 = vst.msk [vmem:[%s448_s3 + $0x58] sm:$0xff] %vm224_vm2, %v205_v24  ;;  %v165_v27 = vadd.f32 %v245_v12, %v164_v25  ;;  %v197_v28 = vadd.f32 %v245_v12, %v196_v26 }
  0xd6   :  { %v288_v29 = vpop.f32.mrf.mxu0  ;;  %v296_v30 = vpop.f32.mrf.mxu1 }
  0xd7   :  { %226 = vst.msk [vmem:[%s448_s3 + $0x8] sm:$0xff] %vm224_vm2, %v165_v27  ;;  %234 = vst.msk [vmem:[%s448_s3 + $0x48] sm:$0xff] %vm224_vm2, %v197_v28  ;;  %v186_v31 = vadd.f32 %v288_v29, %v245_v12  ;;  %v218_v32 = vadd.f32 %v296_v30, %v245_v12 }
  0xd8   :  { %v177_v33 = vpop.f32.mrf.mxu0  ;;  %v209_v34 = vpop.f32.mrf.mxu1 }
  0xd9   :  { %231 = vst.msk [vmem:[%s448_s3 + $0x30] sm:$0xff] %vm224_vm2, %v186_v31  ;;  %239 = vst.msk [vmem:[%s448_s3 + $0x70] sm:$0xff] %vm224_vm2, %v218_v32  ;;  %v178_v35 = vadd.f32 %v245_v12, %v177_v33  ;;  %v210_v36 = vadd.f32 %v245_v12, %v209_v34 }
  0xda   :  { %v289_v37 = vpop.f32.mrf.mxu0  ;;  %v297_v38 = vpop.f32.mrf.mxu1 }
  0xdb   :  { %229 = vst.msk [vmem:[%s448_s3 + $0x20] sm:$0xff] %vm224_vm2, %v178_v35  ;;  %237 = vst.msk [vmem:[%s448_s3 + $0x60] sm:$0xff] %vm224_vm2, %v210_v36  ;;  %v189_v39 = vadd.f32 %v289_v37, %v245_v12  ;;  %v221_v40 = vadd.f32 %v297_v38, %v245_v12 }
  0xdc   :  { %v180_v41 = vpop.f32.mrf.mxu0  ;;  %v212_v42 = vpop.f32.mrf.mxu1 }
  0xdd   :  { %232 = vst.msk [vmem:[%s448_s3 + $0x38] sm:$0xff] %vm224_vm2, %v189_v39  ;;  %240 = vst.msk [vmem:[%s448_s3 + $0x78] sm:$0xff] %vm224_vm2, %v221_v40  ;;  %v181_v43 = vadd.f32 %v245_v12, %v180_v41  ;;  %v213_v44 = vadd.f32 %v245_v12, %v212_v42 }
  0xdf   :  { %230 = vst.msk [vmem:[%s448_s3 + $0x28] sm:$0xff] %vm224_vm2, %v181_v43  ;;  %238 = vst.msk [vmem:[%s448_s3 + $0x68] sm:$0xff] %vm224_vm2, %v213_v44 }

</bundles_post_ra>
